<compile_context>
chip_gen: v7x
topology: tpu7x:2x2x1
jax: 0.10.0
libtpu: 0.0.40
codegen_flags: <defaults>
</compile_context>

<pallas_src>
import functools

import jax
import jax.numpy as jnp
from jax import lax
from jax.experimental import pallas as pl
from jax.experimental.pallas import tpu as pltpu


# ----------------------------------------------------------------------------
# helpers
# ----------------------------------------------------------------------------
def _ceil_to(x, m):
    return ((x + m - 1) // m) * m


def _pad2d(x, shape):
    return jnp.pad(x, [(0, t - s) for s, t in zip(x.shape, shape)])


_VMEM_SPEC = pl.BlockSpec(memory_space=pltpu.MemorySpace.VMEM)
_CPARAMS = pltpu.CompilerParams(vmem_limit_bytes=40 * 1024 * 1024)


def prep_linear(w, b=None, dtype=jnp.bfloat16):
    """Pad a (K,N) weight / (N,) bias once to MXU-friendly shapes."""
    K, N = w.shape
    Kp, Np = _ceil_to(K, 128), _ceil_to(N, 128)
    wp = _pad2d(w.astype(jnp.float32), (Kp, Np)).astype(dtype)
    if b is None:
        bp = jnp.zeros((1, Np), jnp.float32)
    else:
        bp = _pad2d(b.reshape(1, N).astype(jnp.float32), (1, Np))
    return {"w": wp, "b": bp, "k": K, "n": N}


# ----------------------------------------------------------------------------
# Kernel 1: fused MLP chain  act_n(...act_1(x @ W1 + b1)... @ Wn + bn)
#   whole arrays resident in VMEM (single invocation, no grid) — every layer
#   of this model fits; bf16 MXU inputs with f32 accumulation + f32 epilogue.
# ----------------------------------------------------------------------------
def _chain_kernel(*refs, acts):
    x_ref, o_ref = refs[0], refs[-1]
    h = x_ref[...]
    for i, act in enumerate(acts):
        w = refs[1 + 2 * i][...]
        b = refs[2 + 2 * i][...]
        h = jnp.dot(h.astype(jnp.bfloat16), w,
                    preferred_element_type=jnp.float32) + b
        if act == "relu":
            h = jnp.maximum(h, 0.0)
        elif act == "sigmoid":
            h = jax.nn.sigmoid(h)
    o_ref[...] = h.astype(o_ref.dtype)


def pallas_mlp_chain(x, layers, acts):
    """Run a whole Linear(+act) chain in one pallas_call (weights pre-padded)."""
    assert len(layers) == len(acts)
    M, K = x.shape
    Mp = _ceil_to(max(M, 16), 16)               # bf16 sublane packing
    Kp = layers[0]["w"].shape[0]
    xp = _pad2d(x.astype(jnp.float32), (Mp, Kp)).astype(jnp.bfloat16)
    Np = layers[-1]["w"].shape[1]
    n_out = layers[-1]["n"]

    args = [xp]
    for L in layers:
        args.extend([L["w"], L["b"]])

    out = pl.pallas_call(
        functools.partial(_chain_kernel, acts=tuple(acts)),
        out_shape=jax.ShapeDtypeStruct((Mp, Np), jnp.float32),
        in_specs=[_VMEM_SPEC] * len(args),
        out_specs=_VMEM_SPEC,
        compiler_params=_CPARAMS,
    )(*args)
    return out[:M, :n_out]


# ----------------------------------------------------------------------------
# Kernel 2: fused graph convolution
#   aggregate_first=False :  act(A @ (X @ W) + b)     (PyG GCNConv order)
#   aggregate_first=True  :  act((A @ X) @ W + b)     (PEG_conv order)
# ----------------------------------------------------------------------------
def _graphconv_kernel(a_ref, x_ref, w_ref, b_ref, o_ref, *,
                      activation, aggregate_first):
    if aggregate_first:
        m = jnp.dot(a_ref[...], x_ref[...], preferred_element_type=jnp.float32)
        r = jnp.dot(m, w_ref[...], preferred_element_type=jnp.float32)
    else:
        m = jnp.dot(x_ref[...], w_ref[...], preferred_element_type=jnp.float32)
        r = jnp.dot(a_ref[...], m, preferred_element_type=jnp.float32)
    r = r + b_ref[...]
    if activation == "relu":
        r = jnp.maximum(r, 0.0)
    o_ref[...] = r


def pallas_graph_conv(A_p, x_p, lin, *, activation=None, aggregate_first=False):
    n_pad = A_p.shape[0]
    Fp = lin["w"].shape[1]
    return pl.pallas_call(
        functools.partial(_graphconv_kernel, activation=activation,
                          aggregate_first=aggregate_first),
        out_shape=jax.ShapeDtypeStruct((n_pad, Fp), jnp.float32),
        in_specs=[_VMEM_SPEC] * 4,
        out_specs=_VMEM_SPEC,
        compiler_params=_CPARAMS,
    )(A_p, x_p, lin["w"], lin["b"])


# ----------------------------------------------------------------------------
# graph glue (plain-JAX: normalization, dense scatter into padded A, gathers)
# ----------------------------------------------------------------------------
def gcn_norm_dense(edge_index, num_nodes, n_pad):
    """PyG gcn_norm (self-loops + symmetric norm); A scattered at padded size."""
    row, col = edge_index[0], edge_index[1]
    loop = jnp.arange(num_nodes, dtype=row.dtype)
    row = jnp.concatenate([row, loop])
    col = jnp.concatenate([col, loop])
    w = jnp.ones(row.shape[0], jnp.float32)
    deg = jnp.zeros((num_nodes,), jnp.float32).at[col].add(w)
    dinv = jnp.where(deg > 0.0, lax.rsqrt(deg), 0.0)
    norm = dinv[row] * w * dinv[col]
    A = jnp.zeros((n_pad, n_pad), jnp.float32).at[col, row].add(norm)
    return A, row, col, norm


def peg_layer(feats_p, row, col, norm, dist, pp, n_pad):
    """PEG_conv (use_formerinfo=False): coors pass through (not materialized)."""
    # edge MLP on the VPU — a K=1 / K=32 MXU matmul would be ~99% padding.
    h = dist * pp["mlp_w1"][0][None, :] + pp["mlp_b1"][None, :]          # [E,32]
    pe = jax.nn.sigmoid(jnp.sum(h * pp["mlp_w2"][:, 0][None, :], axis=1,
                                keepdims=True) + pp["mlp_b2"][None, :])  # [E,1]
    w_e = pe[:, 0] * norm
    A = jnp.zeros((n_pad, n_pad), jnp.float32).at[col, row].add(w_e)
    # fused (A @ feats) @ W + b on the MXU
    return pallas_graph_conv(A, feats_p, pp["lin"], activation=None,
                             aggregate_first=True)                       # [n_pad,128]


# ----------------------------------------------------------------------------
# GNNat forward
# ----------------------------------------------------------------------------
def gnnat_forward(p, mol_x, mol_edge_index, mol_batch, n_graphs,
                  asso_x, asso_edge_index, miRNA_feature, drug_feature,
                  positional_encoding, id_map):
    # ---------------- molecular GCN branch ----------------
    n_mol = mol_x.shape[0]
    n_mol_p = _ceil_to(n_mol, 128)
    A_mol, _, _, _ = gcn_norm_dense(mol_edge_index, n_mol, n_mol_p)
    x0 = _pad2d(mol_x.astype(jnp.float32),
                (n_mol_p, p["mol_conv"][0]["w"].shape[0]))
    x1 = pallas_graph_conv(A_mol, x0, p["mol_conv"][0], activation="relu")
    x2 = pallas_graph_conv(A_mol, x1, p["mol_conv"][1], activation="relu")
    x3 = pallas_graph_conv(A_mol, x2, p["mol_conv"][2], activation="relu")
    xc = p["mol_w1"] * x1 + p["mol_w2"] * x2 + p["mol_w3"] * x3
    xc = xc[:n_mol, :p["mol_conv"][2]["n"]]                           # [N_mol,156]

    # global mean pool (tiny glue, plain JAX)
    onehot = (mol_batch[None, :] ==
              jnp.arange(n_graphs)[:, None]).astype(jnp.float32)
    counts = jnp.maximum(onehot.sum(axis=1, keepdims=True), 1.0)
    pooled = (onehot / counts) @ xc                                   # [G,156]
    x = pallas_mlp_chain(pooled, [p["mol_fc_g1"], p["mol_fc_g2"]],
                         ("relu", "relu"))                            # [G,128]
    x = x[id_map[0]]                                                  # [B,128]

    # ---------------- PEG association branch ----------------
    n_asso = asso_x.shape[0]
    n_asso_p = _ceil_to(n_asso, 128)
    _, row_a, col_a, norm_a = gcn_norm_dense(asso_edge_index, n_asso, n_asso_p)
    # coors == positional_encoding passes through every PEG layer -> rel_dist
    # is identical for all three layers; compute it once.
    rel = positional_encoding[row_a] - positional_encoding[col_a]
    dist = jnp.sum(rel * rel, axis=-1, keepdims=True)                 # [E+N,1]

    feats0 = _pad2d(asso_x.astype(jnp.float32),
                    (n_asso_p, p["peg"][0]["lin"]["w"].shape[0]))
    h1 = peg_layer(feats0, row_a, col_a, norm_a, dist, p["peg"][0], n_asso_p)
    h2 = peg_layer(h1, row_a, col_a, norm_a, dist, p["peg"][1], n_asso_p)
    h3 = peg_layer(h2, row_a, col_a, norm_a, dist, p["peg"][2], n_asso_p)
    asso = p["asso_w1"] * h1 + p["asso_w2"] * h2 + p["asso_w3"] * h3  # [n_pad,128]

    # ---------------- miRNA / drug MLP branches (one fused kernel each) -----
    mi = pallas_mlp_chain(miRNA_feature, p["miRNA_fc"], ("relu",) * 3)   # [2,128]
    drug = pallas_mlp_chain(drug_feature, p["drug_fc"], ("relu",) * 3)   # [2,128]

    # ---------------- pair construction ----------------
    d_idx, m_idx = id_map[0], id_map[1]
    drug_asso_in = jnp.concatenate([x, asso[d_idx], drug[d_idx]], axis=1)   # [B,384]
    mi_asso_in = jnp.concatenate([mi[m_idx], asso[106 + m_idx]], axis=1)    # [B,256]
    drug_pos = positional_encoding[d_idx]
    miRNA_pos = positional_encoding[m_idx + 106]

    drug_asso = pallas_mlp_chain(drug_asso_in, [p["fc1"]], ("relu",))       # [B,512]
    mi_asso = pallas_mlp_chain(mi_asso_in, [p["fc3"]], ("relu",))           # [B,512]

    drug_mi_mlp = pallas_mlp_chain(jnp.concatenate([drug_asso, mi_asso], 1),
                                   [p["fc5"]], ("relu",))                   # [B,256]
    drug_mi_gtf = pallas_mlp_chain(drug_asso * mi_asso,
                                   [p["gtf1"]], ("sigmoid",))               # [B,256]

    # ---- cross-tensor factorization, algebraically simplified ----
    #   outer[b,i,j] = d[b,i]*m[b,j]  (never materialized)
    #   ctf1(outer)[b,i,k]           = d[b,i]*t1[b,k] + b1[k],   t1 = m @ W1
    #   ctf2(ctf1(outer)^T)[b,k,l]   = t1[b,k]*u[b,l] + b1[k]*S2[l] + b2[l],
    #                                  u = d @ W2,  S2 = column sums of W2
    B = drug_asso.shape[0]
    t1 = pallas_mlp_chain(mi_asso, [p["ctf1_nb"]], (None,))                 # [B,128]
    u = pallas_mlp_chain(drug_asso, [p["ctf2_nb"]], (None,))                # [B,128]
    b1, b2 = p["ctf1_b"], p["ctf2_b"]
    S2 = jnp.sum(p["ctf2_w"], axis=0)                                       # [128]
    c2 = (t1[:, :, None] * u[:, None, :]
          + (b1[:, None] * S2[None, :] + b2[None, :])[None, :, :])          # [B,128,128]
    # ctf3 / ctf4: contract the "other" axis directly -> no materialized transposes
    c3 = lax.dot_general(c2, p["ctf3_w"],
                         (((1,), (0,)), ((), ()))) + p["ctf3_b"][None, None, :]   # [B,128,16]
    c4 = lax.dot_general(c3, p["ctf4_w"],
                         (((1,), (0,)), ((), ()))) + p["ctf4_b"][None, None, :]   # [B,16,16]
    drug_mi_ctf = jnp.transpose(c4, (0, 2, 1)).reshape(B, 256)              # [B,256]

    all_drug_mi = jnp.concatenate([drug_mi_mlp, drug_mi_gtf, drug_mi_ctf], axis=1)
    emb = pallas_mlp_chain(all_drug_mi, [p["final1"], p["final2"]],
                           (None, None))                                    # [B,1]

    rel_dis = jnp.sum((drug_pos - miRNA_pos) ** 2, axis=-1, keepdims=True)  # [B,1]
    mix = jnp.concatenate([emb, rel_dis], axis=1)                           # [B,2]
    # final 2-wide Linear: K=2 would waste >98% of an MXU tile -> plain JAX (VPU)
    return mix @ p["out_w"] + p["out_b"][None, :]                           # [B,1]


# ----------------------------------------------------------------------------
# Deterministic parameter initialization (synthetic weights, pre-padded once)
# ----------------------------------------------------------------------------
def init_params(key):
    keys = iter(jax.random.split(key, 96))

    def lin_raw(fi, fo, bias=True):
        w = jax.random.uniform(next(keys), (fi, fo), jnp.float32, -0.05, 0.05)
        b = (jax.random.uniform(next(keys), (fo,), jnp.float32, -0.05, 0.05)
             if bias else None)
        return w, b

    def lin(fi, fo, bias=True, dtype=jnp.bfloat16):
        w, b = lin_raw(fi, fo, bias)
        return prep_linear(w, b, dtype)

    def peg(fi):
        w, b = lin_raw(fi, 128)
        mw1, mb1 = lin_raw(1, 32)
        mw2, mb2 = lin_raw(32, 1)
        return {"lin": prep_linear(w, b, jnp.float32),
                "mlp_w1": mw1, "mlp_b1": mb1, "mlp_w2": mw2, "mlp_b2": mb2}

    p = {}
    p["mol_conv"] = [lin(78, 156, dtype=jnp.float32),
                     lin(156, 156, dtype=jnp.float32),
                     lin(156, 156, dtype=jnp.float32)]
    p["mol_fc_g1"] = lin(156, 1024)
    p["mol_fc_g2"] = lin(1024, 128)
    p["miRNA_fc"] = [lin(2759, 1024), lin(1024, 512), lin(512, 128)]
    p["drug_fc"] = [lin(1005, 1024), lin(1024, 512), lin(512, 128)]
    p["peg"] = [peg(860), peg(128), peg(128)]
    p["fc1"] = lin(3 * 128, 512)
    p["fc3"] = lin(2 * 128, 512)
    p["fc5"] = lin(1024, 256)
    p["gtf1"] = lin(512, 256, bias=False)
    # ctf: raw copies kept (algebraic rewrite + dot_general use them directly)
    ctf1_w, ctf1_b = lin_raw(512, 128)
    ctf2_w, ctf2_b = lin_raw(512, 128)
    ctf3_w, ctf3_b = lin_raw(128, 16)
    ctf4_w, ctf4_b = lin_raw(128, 16)
    p["ctf1_nb"] = prep_linear(ctf1_w, None)       # bias handled analytically
    p["ctf2_nb"] = prep_linear(ctf2_w, None)
    p["ctf1_b"], p["ctf2_w"], p["ctf2_b"] = ctf1_b, ctf2_w, ctf2_b
    p["ctf3_w"], p["ctf3_b"] = ctf3_w, ctf3_b
    p["ctf4_w"], p["ctf4_b"] = ctf4_w, ctf4_b
    p["final1"] = lin(256 * 3, 128)
    p["final2"] = lin(128, 1)
    p["out_w"], p["out_b"] = lin_raw(2, 1)
    p["mol_w1"], p["mol_w2"], p["mol_w3"] = 0.5, 0.333, 0.25
    p["asso_w1"], p["asso_w2"], p["asso_w3"] = 0.5, 0.333, 0.25
    return p


if __name__ == "__main__":
    key = jax.random.PRNGKey(0)
    k_param, k_data = jax.random.split(key)
    params = init_params(k_param)
    ks = jax.random.split(k_data, 10)

    # small synthetic shapes consistent with the module
    N_mol, E_mol, n_graphs = 20, 40, 2
    mol_x = jax.random.normal(ks[0], (N_mol, 78), jnp.float32)
    mol_edge_index = jax.random.randint(ks[1], (2, E_mol), 0, N_mol, jnp.int32)
    mol_batch = jnp.repeat(jnp.arange(n_graphs, dtype=jnp.int32),
                           N_mol // n_graphs)

    N_asso, E_asso = 108, 300          # 106 drug nodes + 2 miRNA nodes
    asso_x = jax.random.normal(ks[2], (N_asso, 860), jnp.float32)
    asso_edge_index = jax.random.randint(ks[3], (2, E_asso), 0, N_asso, jnp.int32)
    positional_encoding = jax.random.normal(ks[4], (N_asso, 128), jnp.float32)

    miRNA_feature = jax.random.normal(ks[5], (2, 2759), jnp.float32)
    drug_feature = jax.random.normal(ks[6], (2, 1005), jnp.float32)
    id_map = jnp.array([[0, 1], [0, 1]], jnp.int32)   # (drug_idx, miRNA_idx), batch=2

    out = gnnat_forward(params, mol_x, mol_edge_index, mol_batch, n_graphs,
                        asso_x, asso_edge_index, miRNA_feature, drug_feature,
                        positional_encoding, id_map)
    out = jax.block_until_ready(out)
    assert out.shape == (2, 1) and out.dtype == jnp.float32
    print("KERNEL_OK")
</pallas_src>

<mosaic_0001>
module attributes {stable_mosaic.version = 11 : i64} {
  func.func @_graphconv_kernel(%arg0: memref<128x128xf32, #tpu.memory_space<vmem>>, %arg1: memref<128x128xf32, #tpu.memory_space<vmem>>, %arg2: memref<128x256xf32, #tpu.memory_space<vmem>>, %arg3: memref<1x256xf32, #tpu.memory_space<vmem>>, %arg4: memref<128x256xf32, #tpu.memory_space<vmem>>) attributes {dimension_semantics = [], scalar_prefetch = 0 : i64, scratch_operands = 0 : i64, tpu.core_type = #tpu.core_type<tc>} {
    %c0 = arith.constant 0 : index
    %c0_0 = arith.constant 0 : index
    %0 = vector.load %arg1[%c0, %c0_0] : memref<128x128xf32, #tpu.memory_space<vmem>>, vector<128x128xf32>
    %c0_1 = arith.constant 0 : index
    %c0_2 = arith.constant 0 : index
    %1 = vector.load %arg2[%c0_1, %c0_2] : memref<128x256xf32, #tpu.memory_space<vmem>>, vector<128x256xf32>
    %cst = arith.constant dense<0.000000e+00> : vector<128x256xf32>
    %2 = tpu.matmul %0, %1, %cst {dimension_numbers = #tpu.dot_dimension_numbers<[1], [0], [0], [1], [0, 0, 1, 1], [], []>} : vector<128x128xf32>, vector<128x256xf32>, vector<128x256xf32> -> vector<128x256xf32>
    %c0_3 = arith.constant 0 : index
    %c0_4 = arith.constant 0 : index
    %3 = vector.load %arg0[%c0_3, %c0_4] : memref<128x128xf32, #tpu.memory_space<vmem>>, vector<128x128xf32>
    %cst_5 = arith.constant dense<0.000000e+00> : vector<128x256xf32>
    %4 = tpu.matmul %3, %2, %cst_5 {dimension_numbers = #tpu.dot_dimension_numbers<[1], [0], [0], [1], [0, 0, 1, 1], [], []>} : vector<128x128xf32>, vector<128x256xf32>, vector<128x256xf32> -> vector<128x256xf32>
    %c0_6 = arith.constant 0 : index
    %c0_7 = arith.constant 0 : index
    %5 = vector.load %arg3[%c0_6, %c0_7] : memref<1x256xf32, #tpu.memory_space<vmem>>, vector<1x256xf32>
    %6 = vector.broadcast %5 : vector<1x256xf32> to vector<128x256xf32>
    %7 = arith.addf %4, %6 : vector<128x256xf32>
    %cst_8 = arith.constant 0.000000e+00 : f32
    %8 = vector.broadcast %cst_8 : f32 to vector<128x256xf32>
    %9 = arith.maximumf %7, %8 : vector<128x256xf32>
    %c0_9 = arith.constant 0 : index
    %c0_10 = arith.constant 0 : index
    %10 = vector.load %arg4[%c0_9, %c0_10] : memref<128x256xf32, #tpu.memory_space<vmem>>, vector<128x256xf32>
    tpu.vector_store %arg4[%c0_9, %c0_10], %9 {strides = array<i32>} : memref<128x256xf32, #tpu.memory_space<vmem>>, vector<128x256xf32>,
    return
  }
}

</mosaic_0001>

<bundles_post_ra>
// kernel: tpu_custom_call.1
= control target key start
LH: loop header
LB: loop body
LE: loop exit
PB: predicated region body
PF: predicated region fallthrough
CT: control target
= control target key end

     0   :  { %9 = vsyncpa [#allocation3], 0  ;;  %s872_s0 = inlined_call_operand.hbm [shape: f32[128,128], index: 0, kind: input, shape index: {}]   ;;  %s873_s1 = inlined_call_operand.hbm [shape: f32[128,128], index: 1, kind: input, shape index: {}]   ;;  %s874_s2 = inlined_call_operand.hbm [shape: f32[128,256], index: 2, kind: input, shape index: {}]   ;;  %s875_s3 = inlined_call_operand.vmem [shape: f32[1,256], index: 3, kind: input, shape index: {}]   ;;  %s876_s4 = inlined_call_operand.hbm [shape: f32[128,256], index: 4, kind: output, shape index: {}]  }
   0x1   :  { %10 = vsyncpa [#allocation6], 0 }
   0x2   :  { %11 = vsyncpa [#allocation4], 0  ;;  %s706_s15 = smov [#allocation5]   ;;  %s707_s17 = smov [#allocation2]  }
   0x3   :  { %s29_s16 = sshll.u32 %s706_s15, 4  ;;  %s17_s18 = sshll.u32 %s707_s17, 4  ;;  %s30_s16 = int_to_ptr.vmem [resolvable:$true] %s29_s16  ;;  %s740_s18 = int_to_ptr.vmem [resolvable:$true] %s17_s18 }
   0x4   :  { %s612_s21 = scalar_lea.hbm %s873_s1, 2048 }
   0x5   :  { %p613_p0 = scmp.ne.s32.totalorder %s873_s1, %s612_s21  ;;  %p616_p1 = scmp.lt.u32.totalorder %s612_s21, %s873_s1 }
   0x7   :  { %p618_p2 = pnand %p616_p1, %p613_p0 }
   0x9   :  { %621 = shalt.err (!%p618_p2)
}
   0xa   :  { %s622_s26 = scalar_lea.vmem %s30_s16, 2048  ;;  %p627_p4 = scmp.lt.s32.totalorder %s30_s16, %s30_s16 }
   0xb   :  { %p623_p3 = scmp.ne.s32.totalorder %s30_s16, %s622_s26  ;;  %p628_p5 = scmp.lt.s32.totalorder %s622_s26, %s622_s26 }
   0xd   :  { %p629_p6 = por %p628_p5, %p627_p4 }
   0xf   :  { %p630_p7 = pnand %p629_p6, %p623_p3 }
  0x11   :  { %633 = shalt.err (!%p630_p7)
}
  0x12   :  { %s708_s27 = smov 128   ;;  %s709_s28 = smov 8  }
  0x13   :  { %35 = dma.hbm_to_vmem [thread:$0]  %s873_s1, 2048, %s30_s16, [#allocation6], %s708_s27, %s708_s27, %s709_s28  }
  0x14   :  { %s634_s7 = scalar_lea.hbm %s872_s0, 2048 }
  0x15   :  { %p635_p8 = scmp.ne.s32.totalorder %s872_s0, %s634_s7  ;;  %p638_p9 = scmp.lt.u32.totalorder %s634_s7, %s872_s0 }
  0x17   :  { %p640_p10 = pnand %p638_p9, %p635_p8 }
  0x19   :  { %643 = shalt.err (!%p640_p10)
}
  0x1a   :  { %s644_s12 = scalar_lea.vmem %s740_s18, 2048  ;;  %p649_p12 = scmp.lt.s32.totalorder %s740_s18, %s740_s18 }
  0x1b   :  { %p645_p11 = scmp.ne.s32.totalorder %s740_s18, %s644_s12  ;;  %p650_p13 = scmp.lt.s32.totalorder %s644_s12, %s644_s12 }
  0x1d   :  { %p651_p0 = por %p650_p13, %p649_p12 }
  0x1f   :  { %p652_p1 = pnand %p651_p0, %p645_p11 }
  0x21   :  { %655 = shalt.err (!%p652_p1)
}
  0x22   :  { %23 = dma.hbm_to_vmem [thread:$0]  %s872_s0, 2048, %s740_s18, [#allocation3], %s708_s27, %s708_s27, %s709_s28  }
  0x23   :  { %s710_s14 = smov [#allocation7]   ;;  %s656_s19 = scalar_lea.hbm %s874_s2, 4096 }
  0x24   :  { %s41_s15 = sshll.u32 %s710_s14, 4  ;;  %p657_p2 = scmp.ne.s32.totalorder %s874_s2, %s656_s19  ;;  %s42_s15 = int_to_ptr.vmem [resolvable:$true] %s41_s15 }
  0x25   :  { %p660_p3 = scmp.lt.u32.totalorder %s656_s19, %s874_s2 }
  0x27   :  { %p662_p4 = pnand %p660_p3, %p657_p2 }
  0x29   :  { %665 = shalt.err (!%p662_p4)
}
  0x2a   :  { %s666_s24 = scalar_lea.vmem %s42_s15, 4096  ;;  %p671_p6 = scmp.lt.s32.totalorder %s42_s15, %s42_s15 }
  0x2b   :  { %p667_p5 = scmp.ne.s32.totalorder %s42_s15, %s666_s24  ;;  %p672_p7 = scmp.lt.s32.totalorder %s666_s24, %s666_s24 }
  0x2d   :  { %p673_p8 = por %p672_p7, %p671_p6 }
  0x2f   :  { %p674_p9 = pnand %p673_p8, %p667_p5 }
  0x31   :  { %677 = shalt.err (!%p674_p9)
}
  0x32   :  { %s711_s0 = smov 256   ;;  %s712_s18 = smov 16  }
  0x33   :  { %47 = dma.hbm_to_vmem [thread:$0]  %s874_s2, 4096, %s42_s15, [#allocation6], %s711_s0, %s711_s0, %s712_s18  }
  0x34   :  { %700 = dma.done.wait [#allocation3], 2048  }
  0x35   :  { %701 = vsyncadd [#allocation3], 4294965248 }
  0x36   :  { %702 = dma.done.wait [#allocation6], 6144  }
  0x37   :  { %703 = vsyncadd [#allocation6], 4294961152  ;;  %v713_v0 = vmov 0.0   ;;  %v76_v1 = vld [vmem:[#allocation7 + $0x8] sm:$0xff]  ;;  %v78_v2 = vld [vmem:[#allocation7 + $0x18] sm:$0xff] }
  0x38   :  { %171 = vmatprep.mubr.f32.mxu0 %v713_v0  ;;  %360 = vmatprep.mubr.f32.mxu1 %v713_v0  ;;  %v75_v3 = vld [vmem:[#allocation7] sm:$0xff]  ;;  %v539_v4 = vpack.c.bf16 %v78_v2, %v76_v1  ;;  %v77_v5 = vld [vmem:[#allocation7 + $0x10] sm:$0xff]  ;;  %v80_v6 = vld [vmem:[#allocation7 + $0x28] sm:$0xff] }
  0x39   :  { %v82_v7 = vld [vmem:[#allocation7 + $0x38] sm:$0xff]  ;;  %v541_v8 = vpack.c.bf16 %v77_v5, %v75_v3  ;;  %v79_v10 = vld [vmem:[#allocation7 + $0x20] sm:$0xff]  ;;  %v81_v11 = vld [vmem:[#allocation7 + $0x30] sm:$0xff] }
  0x3a   :  { %v543_v9 = vpack.c.bf16 %v82_v7, %v80_v6  ;;  %v84_v12 = vld [vmem:[#allocation7 + $0x48] sm:$0xff]  ;;  %540 = vmatprep.subr.bf16.mxu0 %v539_v4  ;;  %v86_v13 = vld [vmem:[#allocation7 + $0x58] sm:$0xff]  ;;  %v545_v14 = vpack.c.bf16 %v81_v11, %v79_v10  ;;  %v83_v16 = vld [vmem:[#allocation7 + $0x40] sm:$0xff] }
  0x3b   :  { %542 = vmatpush1.bf16.msra.mxu0 %v541_v8  ;;  %v547_v15 = vpack.c.bf16 %v86_v13, %v84_v12  ;;  %v85_v17 = vld [vmem:[#allocation7 + $0x50] sm:$0xff]  ;;  %v88_v18 = vld [vmem:[#allocation7 + $0x68] sm:$0xff]  ;;  %v90_v19 = vld [vmem:[#allocation7 + $0x78] sm:$0xff] }
  0x3c   :  { %544 = vmatprep.subr.bf16.mxu0 %v543_v9  ;;  %v549_v20 = vpack.c.bf16 %v85_v17, %v83_v16  ;;  %v551_v21 = vpack.c.bf16 %v90_v19, %v88_v18  ;;  %v87_v22 = vld [vmem:[#allocation7 + $0x60] sm:$0xff]  ;;  %v89_v23 = vld [vmem:[#allocation7 + $0x70] sm:$0xff]  ;;  %v92_v24 = vld [vmem:[#allocation7 + $0x88] sm:$0xff] }
  0x3d   :  { %v94_v25 = vld [vmem:[#allocation7 + $0x98] sm:$0xff]  ;;  %v553_v26 = vpack.c.bf16 %v89_v23, %v87_v22  ;;  %v91_v28 = vld [vmem:[#allocation7 + $0x80] sm:$0xff]  ;;  %v93_v29 = vld [vmem:[#allocation7 + $0x90] sm:$0xff] }
  0x3e   :  { %v555_v27 = vpack.c.bf16 %v94_v25, %v92_v24  ;;  %v96_v30 = vld [vmem:[#allocation7 + $0xa8] sm:$0xff]  ;;  %v98_v31 = vld [vmem:[#allocation7 + $0xb8] sm:$0xff]  ;;  %v557_v32 = vpack.c.bf16 %v93_v29, %v91_v28  ;;  %v95_v34 = vld [vmem:[#allocation7 + $0xa0] sm:$0xff] }
  0x3f   :  { %546 = vmatpush1.bf16.msra.mxu0 %v545_v14  ;;  %v559_v33 = vpack.c.bf16 %v98_v31, %v96_v30  ;;  %v97_v35 = vld [vmem:[#allocation7 + $0xb0] sm:$0xff]  ;;  %v100_v36 = vld [vmem:[#allocation7 + $0xc8] sm:$0xff]  ;;  %v102_v37 = vld [vmem:[#allocation7 + $0xd8] sm:$0xff] }
  0x40   :  { %548 = vmatprep.subr.bf16.mxu0 %v547_v15  ;;  %v561_v38 = vpack.c.bf16 %v97_v35, %v95_v34  ;;  %v563_v39 = vpack.c.bf16 %v102_v37, %v100_v36  ;;  %v99_v40 = vld [vmem:[#allocation7 + $0xc0] sm:$0xff]  ;;  %v101_v41 = vld [vmem:[#allocation7 + $0xd0] sm:$0xff]  ;;  %v104_v42 = vld [vmem:[#allocation7 + $0xe8] sm:$0xff] }
  0x41   :  { %v106_v43 = vld [vmem:[#allocation7 + $0xf8] sm:$0xff]  ;;  %v565_v44 = vpack.c.bf16 %v101_v41, %v99_v40  ;;  %v103_v46 = vld [vmem:[#allocation7 + $0xe0] sm:$0xff]  ;;  %v105_v47 = vld [vmem:[#allocation7 + $0xf0] sm:$0xff] }
  0x42   :  { %v567_v45 = vpack.c.bf16 %v106_v43, %v104_v42  ;;  %v569_v48 = vpack.c.bf16 %v105_v47, %v103_v46  ;;  %v59_v49 = vld [vmem:[#allocation5] sm:$0xff]  ;;  %v60_v50 = vld [vmem:[#allocation5 + $0x8] sm:$0xff]  ;;  %v61_v51 = vld [vmem:[#allocation5 + $0x10] sm:$0xff] }
  0x43   :  { %550 = vmatpush1.bf16.msra.mxu0 %v549_v20  ;;  %v62_v52 = vld [vmem:[#allocation5 + $0x18] sm:$0xff]  ;;  %v63_v53 = vld [vmem:[#allocation5 + $0x20] sm:$0xff]  ;;  %v64_v54 = vld [vmem:[#allocation5 + $0x28] sm:$0xff] }
  0x44   :  { %552 = vmatprep.subr.bf16.mxu0 %v551_v21  ;;  %v65_v55 = vld [vmem:[#allocation5 + $0x30] sm:$0xff]  ;;  %v66_v56 = vld [vmem:[#allocation5 + $0x38] sm:$0xff]  ;;  %v67_v57 = vld [vmem:[#allocation5 + $0x40] sm:$0xff] }
  0x45   :  { %v68_v58 = vld [vmem:[#allocation5 + $0x48] sm:$0xff]  ;;  %v69_v59 = vld [vmem:[#allocation5 + $0x50] sm:$0xff]  ;;  %v70_v60 = vld [vmem:[#allocation5 + $0x58] sm:$0xff] }
  0x46   :  { %v71_v61 = vld [vmem:[#allocation5 + $0x60] sm:$0xff]  ;;  %v72_v62 = vld [vmem:[#allocation5 + $0x68] sm:$0xff]  ;;  %v73_v63 = vld [vmem:[#allocation5 + $0x70] sm:$0xff] }
  0x47   :  { %554 = vmatpush1.bf16.msra.mxu0 %v553_v26  ;;  %v74_v1 = vld [vmem:[#allocation5 + $0x78] sm:$0xff] }
  0x48   :  { %556 = vmatprep.subr.bf16.mxu0 %v555_v27 }
  0x4b   :  { %558 = vmatpush1.bf16.msra.mxu0 %v557_v32 }
  0x4c   :  { %560 = vmatprep.subr.bf16.mxu0 %v559_v33 }
  0x4f   :  { %562 = vmatpush1.bf16.msra.mxu0 %v561_v38 }
  0x50   :  { %564 = vmatprep.subr.bf16.mxu0 %v563_v39 }
  0x53   :  { %566 = vmatpush1.bf16.msra.mxu0 %v565_v44 }
  0x54   :  { %568 = vmatprep.subr.bf16.mxu0 %v567_v45 }
  0x57   :  { %570 = vmatpush1.bf16.msra.mxu0 %v569_v48 }
  0x5a   :  { %172 = vmatmul.mubr.f32.vlgmr.msra.gmra.mrb[0].mxu0 %v59_v49 }
  0x5b   :  { %177 = vmatprep.mubr.f32.mxu0 %v713_v0 }
  0x5e   :  { %178 = vmatmul.mubr.f32.gmra.mrb[2].mxu0 %v60_v50  ;;  %v268_v50 = vld [vmem:[#allocation2] sm:$0xff] }
  0x5f   :  { %183 = vmatprep.mubr.f32.mxu0 %v713_v0 }
  0x62   :  { %184 = vmatmul.mubr.f32.gmra.mrb[4].mxu0 %v61_v51  ;;  %v269_v51 = vld [vmem:[#allocation2 + $0x8] sm:$0xff] }
  0x63   :  { %189 = vmatprep.mubr.f32.mxu0 %v713_v0 }
  0x66   :  { %190 = vmatmul.mubr.f32.gmra.mrb[6].mxu0 %v62_v52  ;;  %v270_v52 = vld [vmem:[#allocation2 + $0x10] sm:$0xff] }
  0x67   :  { %195 = vmatprep.mubr.f32.mxu0 %v713_v0 }
  0x6a   :  { %196 = vmatmul.mubr.f32.gmra.mrb[8].mxu0 %v63_v53  ;;  %v271_v53 = vld [vmem:[#allocation2 + $0x18] sm:$0xff] }
  0x6b   :  { %201 = vmatprep.mubr.f32.mxu0 %v713_v0 }
  0x6e   :  { %202 = vmatmul.mubr.f32.gmra.mrb[10].mxu0 %v64_v54  ;;  %v272_v54 = vld [vmem:[#allocation2 + $0x20] sm:$0xff] }
  0x6f   :  { %207 = vmatprep.mubr.f32.mxu0 %v713_v0 }
  0x72   :  { %208 = vmatmul.mubr.f32.gmra.mrb[12].mxu0 %v65_v55  ;;  %v273_v55 = vld [vmem:[#allocation2 + $0x28] sm:$0xff] }
  0x73   :  { %213 = vmatprep.mubr.f32.mxu0 %v713_v0 }
  0x76   :  { %214 = vmatmul.mubr.f32.gmra.mrb[14].mxu0 %v66_v56  ;;  %v274_v56 = vld [vmem:[#allocation2 + $0x30] sm:$0xff] }
  0x77   :  { %219 = vmatprep.mubr.f32.mxu0 %v713_v0 }
  0x7a   :  { %220 = vmatmul.mubr.f32.gmra.mrb[16].mxu0 %v67_v57  ;;  %v275_v57 = vld [vmem:[#allocation2 + $0x38] sm:$0xff] }
  0x7b   :  { %225 = vmatprep.mubr.f32.mxu0 %v713_v0 }
  0x7e   :  { %226 = vmatmul.mubr.f32.gmra.mrb[18].mxu0 %v68_v58  ;;  %v276_v58 = vld [vmem:[#allocation2 + $0x40] sm:$0xff] }
  0x7f   :  { %231 = vmatprep.mubr.f32.mxu0 %v713_v0 }
  0x82   :  { %232 = vmatmul.mubr.f32.gmra.mrb[20].mxu0 %v69_v59  ;;  %v277_v59 = vld [vmem:[#allocation2 + $0x48] sm:$0xff] }
  0x83   :  { %237 = vmatprep.mubr.f32.mxu0 %v713_v0 }
  0x86   :  { %238 = vmatmul.mubr.f32.gmra.mrb[22].mxu0 %v70_v60  ;;  %v278_v60 = vld [vmem:[#allocation2 + $0x50] sm:$0xff] }
  0x87   :  { %243 = vmatprep.mubr.f32.mxu0 %v713_v0 }
  0x8a   :  { %244 = vmatmul.mubr.f32.gmra.mrb[24].mxu0 %v71_v61  ;;  %v279_v61 = vld [vmem:[#allocation2 + $0x58] sm:$0xff] }
  0x8b   :  { %249 = vmatprep.mubr.f32.mxu0 %v713_v0 }
  0x8e   :  { %250 = vmatmul.mubr.f32.gmra.mrb[26].mxu0 %v72_v62  ;;  %v280_v62 = vld [vmem:[#allocation2 + $0x60] sm:$0xff] }
  0x8f   :  { %255 = vmatprep.mubr.f32.mxu0 %v713_v0 }
  0x92   :  { %256 = vmatmul.mubr.f32.gmra.mrb[28].mxu0 %v73_v63  ;;  %v281_v63 = vld [vmem:[#allocation2 + $0x68] sm:$0xff] }
  0x93   :  { %261 = vmatprep.mubr.f32.mxu0 %v713_v0 }
  0x96   :  { %262 = vmatmul.mubr.f32.gmra.mrb[30].mxu0 %v74_v1  ;;  %v282_v1 = vld [vmem:[#allocation2 + $0x70] sm:$0xff] }
 0x12d   :  { %v173_v2 = vpop.f32.mrb[0].mxu0 }
 0x12e   :  { %v175_v3 = vpop.f32.mrb[1].mxu0 }
 0x131   :  { %v179_v4 = vpop.f32.mrb[2].mxu0 }
 0x132   :  { %v573_v5 = vpack.c.bf16 %v179_v4, %v173_v2  ;;  %v181_v6 = vpop.f32.mrb[3].mxu0  ;;  %v283_v2 = vld [vmem:[#allocation2 + $0x78] sm:$0xff] }
 0x133   :  { %v571_v7 = vpack.c.bf16 %v181_v6, %v175_v3  ;;  %v286_v3 = vlaneseq  ;;  %v284_v6 = vld [vmem:[%s875_s3] sm:$0x3]  ;;  %s714_s3 = smov [#allocation8]  }
 0x134   :  { %s526_s28 = sshll.u32 %s714_s3, 4  ;;  %s527_s28 = int_to_ptr.vmem [resolvable:$true] %s526_s28 }
 0x135   :  { %v185_v8 = vpop.f32.mrb[4].mxu0  ;;  %572 = vmatprep.subr.bf16.mxu1 %v571_v7  ;;  %v287_v4 = vshrl.u32 %v286_v3, 7  ;;  %s678_s29 = scalar_lea.vmem %s527_s28, 4096  ;;  %p683_p11 = scmp.lt.s32.totalorder %s527_s28, %s527_s28 }
 0x136   :  { %v187_v9 = vpop.f32.mrb[5].mxu0  ;;  %574 = vmatpush1.bf16.msra.mxu1 %v573_v5  ;;  %p679_p10 = scmp.ne.s32.totalorder %s527_s28, %s678_s29  ;;  %p684_p12 = scmp.lt.s32.totalorder %s678_s29, %s678_s29 }
 0x137   :  { %v288_v5 = vsub.s32 0, %v287_v4  ;;  %v292_v7 = vsub.s32 1, %v287_v4 }
 0x138   :  { %p685_p13 = por %p684_p12, %p683_p11 }
 0x139   :  { %v191_v10 = vpop.f32.mrb[6].mxu0 }
 0x13a   :  { %v577_v11 = vpack.c.bf16 %v191_v10, %v185_v8  ;;  %v193_v12 = vpop.f32.mrb[7].mxu0  ;;  %v821_v8 = vrot.slane %v284_v6, %v288_v5  ;;  %p686_p0 = pnand %p685_p13, %p679_p10 }
 0x13b   :  { %v575_v13 = vpack.c.bf16 %v193_v12, %v187_v9  ;;  %v823_v9 = vrot.slane %v284_v6, %v292_v7 }
 0x13d   :  { %v197_v14 = vpop.f32.mrb[8].mxu0  ;;  %576 = vmatprep.subr.bf16.mxu1 %v575_v13 }
 0x13e   :  { %v199_v15 = vpop.f32.mrb[9].mxu0  ;;  %578 = vmatpush1.bf16.msra.mxu1 %v577_v11 }
 0x141   :  { %v203_v16 = vpop.f32.mrb[10].mxu0 }
 0x142   :  { %v581_v17 = vpack.c.bf16 %v203_v16, %v197_v14  ;;  %v205_v18 = vpop.f32.mrb[11].mxu0 }
 0x143   :  { %v579_v19 = vpack.c.bf16 %v205_v18, %v199_v15 }
 0x145   :  { %v209_v20 = vpop.f32.mrb[12].mxu0  ;;  %580 = vmatprep.subr.bf16.mxu1 %v579_v19 }
 0x146   :  { %v211_v21 = vpop.f32.mrb[13].mxu0  ;;  %582 = vmatpush1.bf16.msra.mxu1 %v581_v17 }
 0x149   :  { %v215_v22 = vpop.f32.mrb[14].mxu0 }
 0x14a   :  { %v585_v23 = vpack.c.bf16 %v215_v22, %v209_v20  ;;  %v217_v24 = vpop.f32.mrb[15].mxu0 }
 0x14b   :  { %v583_v25 = vpack.c.bf16 %v217_v24, %v211_v21 }
 0x14d   :  { %v221_v26 = vpop.f32.mrb[16].mxu0  ;;  %584 = vmatprep.subr.bf16.mxu1 %v583_v25 }
 0x14e   :  { %v223_v27 = vpop.f32.mrb[17].mxu0  ;;  %586 = vmatpush1.bf16.msra.mxu1 %v585_v23 }
 0x151   :  { %v227_v28 = vpop.f32.mrb[18].mxu0 }
 0x152   :  { %v589_v29 = vpack.c.bf16 %v227_v28, %v221_v26  ;;  %v229_v30 = vpop.f32.mrb[19].mxu0 }
 0x153   :  { %v587_v31 = vpack.c.bf16 %v229_v30, %v223_v27 }
 0x155   :  { %v233_v32 = vpop.f32.mrb[20].mxu0  ;;  %588 = vmatprep.subr.bf16.mxu1 %v587_v31 }
 0x156   :  { %v235_v33 = vpop.f32.mrb[21].mxu0  ;;  %590 = vmatpush1.bf16.msra.mxu1 %v589_v29 }
 0x159   :  { %v239_v34 = vpop.f32.mrb[22].mxu0 }
 0x15a   :  { %v593_v35 = vpack.c.bf16 %v239_v34, %v233_v32  ;;  %v241_v36 = vpop.f32.mrb[23].mxu0 }
 0x15b   :  { %v591_v37 = vpack.c.bf16 %v241_v36, %v235_v33 }
 0x15d   :  { %v245_v38 = vpop.f32.mrb[24].mxu0  ;;  %592 = vmatprep.subr.bf16.mxu1 %v591_v37 }
 0x15e   :  { %v247_v39 = vpop.f32.mrb[25].mxu0  ;;  %594 = vmatpush1.bf16.msra.mxu1 %v593_v35 }
 0x161   :  { %v251_v40 = vpop.f32.mrb[26].mxu0 }
 0x162   :  { %v597_v41 = vpack.c.bf16 %v251_v40, %v245_v38  ;;  %v253_v42 = vpop.f32.mrb[27].mxu0 }
 0x163   :  { %v595_v43 = vpack.c.bf16 %v253_v42, %v247_v39 }
 0x165   :  { %v257_v44 = vpop.f32.mrb[28].mxu0  ;;  %596 = vmatprep.subr.bf16.mxu1 %v595_v43 }
 0x166   :  { %v259_v45 = vpop.f32.mrb[29].mxu0  ;;  %598 = vmatpush1.bf16.msra.mxu1 %v597_v41 }
 0x169   :  { %v263_v46 = vpop.f32.mrb[30].mxu0 }
 0x16a   :  { %v601_v47 = vpack.c.bf16 %v263_v46, %v257_v44  ;;  %v265_v48 = vpop.f32.mrb[31].mxu0 }
 0x16b   :  { %v599_v49 = vpack.c.bf16 %v265_v48, %v259_v45 }
 0x16d   :  { %600 = vmatprep.subr.bf16.mxu1 %v599_v49 }
 0x16e   :  { %602 = vmatpush1.bf16.msra.mxu1 %v601_v47 }
 0x171   :  { %361 = vmatmul.mubr.f32.vlgmr.msra.gmra.mrb[0].mxu1 %v268_v50 }
 0x172   :  { %366 = vmatprep.mubr.f32.mxu1 %v713_v0 }
 0x175   :  { %367 = vmatmul.mubr.f32.gmra.mrb[2].mxu1 %v269_v51 }
 0x176   :  { %372 = vmatprep.mubr.f32.mxu1 %v713_v0 }
 0x179   :  { %373 = vmatmul.mubr.f32.gmra.mrb[4].mxu1 %v270_v52 }
 0x17a   :  { %378 = vmatprep.mubr.f32.mxu1 %v713_v0 }
 0x17d   :  { %379 = vmatmul.mubr.f32.gmra.mrb[6].mxu1 %v271_v53 }
 0x17e   :  { %384 = vmatprep.mubr.f32.mxu1 %v713_v0 }
 0x181   :  { %385 = vmatmul.mubr.f32.gmra.mrb[8].mxu1 %v272_v54 }
 0x182   :  { %390 = vmatprep.mubr.f32.mxu1 %v713_v0 }
 0x185   :  { %391 = vmatmul.mubr.f32.gmra.mrb[10].mxu1 %v273_v55 }
 0x186   :  { %396 = vmatprep.mubr.f32.mxu1 %v713_v0 }
 0x189   :  { %397 = vmatmul.mubr.f32.gmra.mrb[12].mxu1 %v274_v56 }
 0x18a   :  { %402 = vmatprep.mubr.f32.mxu1 %v713_v0 }
 0x18d   :  { %403 = vmatmul.mubr.f32.gmra.mrb[14].mxu1 %v275_v57 }
 0x18e   :  { %408 = vmatprep.mubr.f32.mxu1 %v713_v0 }
 0x191   :  { %409 = vmatmul.mubr.f32.gmra.mrb[16].mxu1 %v276_v58 }
 0x192   :  { %414 = vmatprep.mubr.f32.mxu1 %v713_v0 }
 0x195   :  { %415 = vmatmul.mubr.f32.gmra.mrb[18].mxu1 %v277_v59 }
 0x196   :  { %420 = vmatprep.mubr.f32.mxu1 %v713_v0 }
 0x199   :  { %421 = vmatmul.mubr.f32.gmra.mrb[20].mxu1 %v278_v60 }
 0x19a   :  { %426 = vmatprep.mubr.f32.mxu1 %v713_v0 }
 0x19d   :  { %427 = vmatmul.mubr.f32.gmra.mrb[22].mxu1 %v279_v61 }
 0x19e   :  { %432 = vmatprep.mubr.f32.mxu1 %v713_v0 }
 0x1a1   :  { %433 = vmatmul.mubr.f32.gmra.mrb[24].mxu1 %v280_v62 }
 0x1a2   :  { %438 = vmatprep.mubr.f32.mxu1 %v713_v0 }
 0x1a5   :  { %439 = vmatmul.mubr.f32.gmra.mrb[26].mxu1 %v281_v63 }
 0x1a6   :  { %444 = vmatprep.mubr.f32.mxu1 %v713_v0 }
 0x1a9   :  { %445 = vmatmul.mubr.f32.gmra.mrb[28].mxu1 %v282_v1 }
 0x1aa   :  { %450 = vmatprep.mubr.f32.mxu1 %v713_v0 }
 0x1ad   :  { %451 = vmatmul.mubr.f32.gmra.mrb[30].mxu1 %v283_v2 }
 0x244   :  { %v362_v10 = vpop.f32.mrb[0].mxu1 }
 0x245   :  { %v363_v11 = vadd.f32 %v362_v10, %v821_v8  ;;  %v364_v12 = vpop.f32.mrb[1].mxu1 }
 0x246   :  { %v365_v0 = vadd.f32 %v364_v12, %v823_v9 }
 0x247   :  { %v457_v13 = vmax.f32 %v363_v11, 0.0 }
 0x248   :  { %v458_v14 = vmax.f32 %v365_v0, 0.0  ;;  %v368_v15 = vpop.f32.mrb[2].mxu1 }
 0x249   :  { %489 = vst [vmem:[#allocation8] sm:$0xff] %v457_v13  ;;  %v369_v16 = vadd.f32 %v368_v15, %v821_v8  ;;  %v370_v17 = vpop.f32.mrb[3].mxu1 }
 0x24a   :  { %490 = vst [vmem:[#allocation8 + $0x8] sm:$0xff] %v458_v14  ;;  %v371_v18 = vadd.f32 %v370_v17, %v823_v9 }
 0x24b   :  { %v459_v19 = vmax.f32 %v369_v16, 0.0 }
 0x24c   :  { %v460_v20 = vmax.f32 %v371_v18, 0.0  ;;  %v374_v21 = vpop.f32.mrb[4].mxu1 }
 0x24d   :  { %491 = vst [vmem:[#allocation8 + $0x10] sm:$0xff] %v459_v19  ;;  %v375_v22 = vadd.f32 %v374_v21, %v821_v8  ;;  %v376_v23 = vpop.f32.mrb[5].mxu1 }
 0x24e   :  { %492 = vst [vmem:[#allocation8 + $0x18] sm:$0xff] %v460_v20  ;;  %v377_v24 = vadd.f32 %v376_v23, %v823_v9 }
 0x24f   :  { %v461_v25 = vmax.f32 %v375_v22, 0.0 }
 0x250   :  { %v462_v26 = vmax.f32 %v377_v24, 0.0  ;;  %v380_v27 = vpop.f32.mrb[6].mxu1 }
 0x251   :  { %493 = vst [vmem:[#allocation8 + $0x20] sm:$0xff] %v461_v25  ;;  %v381_v28 = vadd.f32 %v380_v27, %v821_v8  ;;  %v382_v29 = vpop.f32.mrb[7].mxu1 }
 0x252   :  { %494 = vst [vmem:[#allocation8 + $0x28] sm:$0xff] %v462_v26  ;;  %v383_v30 = vadd.f32 %v382_v29, %v823_v9 }
 0x253   :  { %v463_v31 = vmax.f32 %v381_v28, 0.0 }
 0x254   :  { %v464_v32 = vmax.f32 %v383_v30, 0.0  ;;  %v386_v33 = vpop.f32.mrb[8].mxu1 }
 0x255   :  { %495 = vst [vmem:[#allocation8 + $0x30] sm:$0xff] %v463_v31  ;;  %v387_v34 = vadd.f32 %v386_v33, %v821_v8  ;;  %v388_v35 = vpop.f32.mrb[9].mxu1 }
 0x256   :  { %496 = vst [vmem:[#allocation8 + $0x38] sm:$0xff] %v464_v32  ;;  %v389_v36 = vadd.f32 %v388_v35, %v823_v9 }
 0x257   :  { %v465_v37 = vmax.f32 %v387_v34, 0.0 }
 0x258   :  { %v466_v38 = vmax.f32 %v389_v36, 0.0  ;;  %v392_v39 = vpop.f32.mrb[10].mxu1 }
 0x259   :  { %497 = vst [vmem:[#allocation8 + $0x40] sm:$0xff] %v465_v37  ;;  %v393_v40 = vadd.f32 %v392_v39, %v821_v8  ;;  %v394_v41 = vpop.f32.mrb[11].mxu1 }
 0x25a   :  { %498 = vst [vmem:[#allocation8 + $0x48] sm:$0xff] %v466_v38  ;;  %v395_v42 = vadd.f32 %v394_v41, %v823_v9 }
 0x25b   :  { %v467_v43 = vmax.f32 %v393_v40, 0.0 }
 0x25c   :  { %v468_v44 = vmax.f32 %v395_v42, 0.0  ;;  %v398_v45 = vpop.f32.mrb[12].mxu1 }
 0x25d   :  { %499 = vst [vmem:[#allocation8 + $0x50] sm:$0xff] %v467_v43  ;;  %v399_v46 = vadd.f32 %v398_v45, %v821_v8  ;;  %v400_v47 = vpop.f32.mrb[13].mxu1 }
 0x25e   :  { %500 = vst [vmem:[#allocation8 + $0x58] sm:$0xff] %v468_v44  ;;  %v401_v48 = vadd.f32 %v400_v47, %v823_v9 }
 0x25f   :  { %v469_v49 = vmax.f32 %v399_v46, 0.0 }
 0x260   :  { %v470_v50 = vmax.f32 %v401_v48, 0.0  ;;  %v404_v51 = vpop.f32.mrb[14].mxu1 }
 0x261   :  { %501 = vst [vmem:[#allocation8 + $0x60] sm:$0xff] %v469_v49  ;;  %v405_v52 = vadd.f32 %v404_v51, %v821_v8  ;;  %v406_v53 = vpop.f32.mrb[15].mxu1 }
 0x262   :  { %502 = vst [vmem:[#allocation8 + $0x68] sm:$0xff] %v470_v50  ;;  %v407_v54 = vadd.f32 %v406_v53, %v823_v9 }
 0x263   :  { %v471_v55 = vmax.f32 %v405_v52, 0.0 }
 0x264   :  { %v472_v56 = vmax.f32 %v407_v54, 0.0  ;;  %v410_v57 = vpop.f32.mrb[16].mxu1 }
 0x265   :  { %503 = vst [vmem:[#allocation8 + $0x70] sm:$0xff] %v471_v55  ;;  %v411_v58 = vadd.f32 %v410_v57, %v821_v8  ;;  %v412_v59 = vpop.f32.mrb[17].mxu1 }
 0x266   :  { %504 = vst [vmem:[#allocation8 + $0x78] sm:$0xff] %v472_v56  ;;  %v413_v60 = vadd.f32 %v412_v59, %v823_v9 }
 0x267   :  { %v473_v61 = vmax.f32 %v411_v58, 0.0 }
 0x268   :  { %v474_v62 = vmax.f32 %v413_v60, 0.0  ;;  %v416_v63 = vpop.f32.mrb[18].mxu1 }
 0x269   :  { %505 = vst [vmem:[#allocation8 + $0x80] sm:$0xff] %v473_v61  ;;  %v417_v1 = vadd.f32 %v416_v63, %v821_v8  ;;  %v418_v2 = vpop.f32.mrb[19].mxu1 }
 0x26a   :  { %506 = vst [vmem:[#allocation8 + $0x88] sm:$0xff] %v474_v62  ;;  %v419_v3 = vadd.f32 %v418_v2, %v823_v9 }
 0x26b   :  { %v475_v4 = vmax.f32 %v417_v1, 0.0 }
 0x26c   :  { %v476_v5 = vmax.f32 %v419_v3, 0.0  ;;  %v422_v6 = vpop.f32.mrb[20].mxu1 }
 0x26d   :  { %507 = vst [vmem:[#allocation8 + $0x90] sm:$0xff] %v475_v4  ;;  %v423_v7 = vadd.f32 %v422_v6, %v821_v8  ;;  %v424_v10 = vpop.f32.mrb[21].mxu1 }
 0x26e   :  { %508 = vst [vmem:[#allocation8 + $0x98] sm:$0xff] %v476_v5  ;;  %v425_v11 = vadd.f32 %v424_v10, %v823_v9 }
 0x26f   :  { %v477_v12 = vmax.f32 %v423_v7, 0.0 }
 0x270   :  { %v478_v0 = vmax.f32 %v425_v11, 0.0  ;;  %v428_v13 = vpop.f32.mrb[22].mxu1 }
 0x271   :  { %509 = vst [vmem:[#allocation8 + $0xa0] sm:$0xff] %v477_v12  ;;  %v429_v14 = vadd.f32 %v428_v13, %v821_v8  ;;  %v430_v15 = vpop.f32.mrb[23].mxu1 }
 0x272   :  { %510 = vst [vmem:[#allocation8 + $0xa8] sm:$0xff] %v478_v0  ;;  %v431_v16 = vadd.f32 %v430_v15, %v823_v9 }
 0x273   :  { %v479_v17 = vmax.f32 %v429_v14, 0.0 }
 0x274   :  { %v480_v18 = vmax.f32 %v431_v16, 0.0  ;;  %v434_v19 = vpop.f32.mrb[24].mxu1 }
 0x275   :  { %511 = vst [vmem:[#allocation8 + $0xb0] sm:$0xff] %v479_v17  ;;  %v435_v20 = vadd.f32 %v434_v19, %v821_v8  ;;  %v436_v21 = vpop.f32.mrb[25].mxu1 }
 0x276   :  { %512 = vst [vmem:[#allocation8 + $0xb8] sm:$0xff] %v480_v18  ;;  %v437_v22 = vadd.f32 %v436_v21, %v823_v9 }
 0x277   :  { %v481_v23 = vmax.f32 %v435_v20, 0.0 }
 0x278   :  { %v482_v24 = vmax.f32 %v437_v22, 0.0  ;;  %v440_v25 = vpop.f32.mrb[26].mxu1 }
 0x279   :  { %513 = vst [vmem:[#allocation8 + $0xc0] sm:$0xff] %v481_v23  ;;  %v441_v26 = vadd.f32 %v440_v25, %v821_v8  ;;  %v442_v27 = vpop.f32.mrb[27].mxu1 }
 0x27a   :  { %514 = vst [vmem:[#allocation8 + $0xc8] sm:$0xff] %v482_v24  ;;  %v443_v28 = vadd.f32 %v442_v27, %v823_v9 }
 0x27b   :  { %v483_v29 = vmax.f32 %v441_v26, 0.0 }
 0x27c   :  { %v484_v30 = vmax.f32 %v443_v28, 0.0  ;;  %v446_v31 = vpop.f32.mrb[28].mxu1 }
 0x27d   :  { %515 = vst [vmem:[#allocation8 + $0xd0] sm:$0xff] %v483_v29  ;;  %v447_v32 = vadd.f32 %v446_v31, %v821_v8  ;;  %v448_v33 = vpop.f32.mrb[29].mxu1 }
 0x27e   :  { %516 = vst [vmem:[#allocation8 + $0xd8] sm:$0xff] %v484_v30  ;;  %v449_v34 = vadd.f32 %v448_v33, %v823_v9 }
 0x27f   :  { %v485_v35 = vmax.f32 %v447_v32, 0.0 }
 0x280   :  { %v486_v36 = vmax.f32 %v449_v34, 0.0  ;;  %v452_v37 = vpop.f32.mrb[30].mxu1 }
 0x281   :  { %517 = vst [vmem:[#allocation8 + $0xe0] sm:$0xff] %v485_v35  ;;  %v453_v38 = vadd.f32 %v452_v37, %v821_v8  ;;  %v454_v39 = vpop.f32.mrb[31].mxu1 }
 0x282   :  { %518 = vst [vmem:[#allocation8 + $0xe8] sm:$0xff] %v486_v36  ;;  %v455_v40 = vadd.f32 %v454_v39, %v823_v9 }
 0x283   :  { %v487_v41 = vmax.f32 %v453_v38, 0.0 }
 0x284   :  { %v488_v42 = vmax.f32 %v455_v40, 0.0 }
 0x285   :  { %519 = vst [vmem:[#allocation8 + $0xf0] sm:$0xff] %v487_v41 }
 0x286   :  { %520 = vst [vmem:[#allocation8 + $0xf8] sm:$0xff] %v488_v42 }
 0x287   :  { %689 = shalt.err (!%p686_p0)
}
 0x288   :  { %s690_s6 = scalar_lea.hbm %s876_s4, 4096 }
 0x289   :  { %p691_p1 = scmp.ne.s32.totalorder %s876_s4, %s690_s6  ;;  %p694_p2 = scmp.lt.u32.totalorder %s690_s6, %s876_s4 }
 0x28b   :  { %p696_p3 = pnand %p694_p2, %p691_p1 }
 0x28d   :  { %699 = shalt.err (!%p696_p3)
}
 0x28e   :  { %532 = dma.vmem_to_hbm [thread:$0]  %s527_s28, 4096, %s876_s4, [#allocation4], %s711_s0, %s711_s0, %s712_s18  }
 0x28f   :  { %704 = dma.done.wait [#allocation4], 4096  }
 0x290   :  { %705 = vsyncadd [#allocation4], 4294963200 }
 0x291   :  { %536 = vsyncpa [#allocation3], 1 }
 0x292   :  { %537 = vsyncpa [#allocation6], 1 }
 0x293   :  { %538 = vsyncpa [#allocation4], 1 }

</bundles_post_ra>
